<compile_context>
chip_gen: v5e
topology: v5e:2x2
jax: 0.10.0
libtpu: 0.0.40
codegen_flags: <defaults>
</compile_context>

<pallas_src>
import functools

import jax
import jax.numpy as jnp
from jax import lax
from jax.experimental import pallas as pl
from jax.experimental.pallas import tpu as pltpu

_LANES = 128
_SUBLANES = 8
_MAX_BLOCK_ROWS = 4096  # (4096, 128) f32 = 2 MiB per input block


def _l2_partial_kernel(pred_ref, truth_ref, part_ref, *, block_rows, total_rows,
                       need_mask):
    """One grid step: sum of squared diffs over this block, folded to (8, 128)."""
    d = pred_ref[...].astype(jnp.float32) - truth_ref[...].astype(jnp.float32)

    if need_mask:
        # Last block may extend past the real rows; zero the invalid rows.
        i = pl.program_id(0)
        row = lax.broadcasted_iota(jnp.int32, (block_rows, _LANES), 0)
        valid = (i * block_rows + row) < total_rows
        d = jnp.where(valid, d, jnp.float32(0.0))

    d2 = d * d
    # Fold sublane-groups of vregs together: pure VPU adds, no XLU, no SMEM.
    part_ref[...] = d2.reshape(block_rows // _SUBLANES, _SUBLANES, _LANES).sum(
        axis=0)


def l2_loss(pred, truth):
    """sqrt(mean((pred - truth) ** 2)), matching torch.sqrt(nn.MSELoss()(p, t))."""
    assert pred.shape == truth.shape, "pred/truth must share a shape"
    n_elements = int(pred.size)
    if n_elements == 0:
        return jnp.float32(float("nan"))  # 0/0 in the reference; guard here.

    pred_f = pred.reshape(-1)
    truth_f = truth.reshape(-1)

    # Keep rows a multiple of 8 so the in-kernel (.., 8, 128) fold is exact.
    chunk = _SUBLANES * _LANES  # 1024
    pad = (-n_elements) % chunk
    if pad:
        # TODO(synk): could be masked fully in-kernel; pad is <= 1023 elements
        # and only fires for sizes that are not a multiple of 1024.
        pred_f = jnp.pad(pred_f, (0, pad))
        truth_f = jnp.pad(truth_f, (0, pad))

    rows = (n_elements + pad) // _LANES
    pred2d = pred_f.reshape(rows, _LANES)    # native dtype, no f32 upcast here
    truth2d = truth_f.reshape(rows, _LANES)

    block_rows = min(_MAX_BLOCK_ROWS, rows)
    num_blocks = (rows + block_rows - 1) // block_rows
    need_mask = (rows % block_rows) != 0

    kernel = functools.partial(
        _l2_partial_kernel,
        block_rows=block_rows,
        total_rows=rows,
        need_mask=need_mask,
    )

    out_rows = num_blocks * _SUBLANES
    cost = pl.CostEstimate(
        flops=3 * n_elements,  # sub, mul, add per element
        transcendentals=0,
        bytes_accessed=(pred2d.size * pred2d.dtype.itemsize
                        + truth2d.size * truth2d.dtype.itemsize
                        + out_rows * _LANES * 4),
    )

    partials = pl.pallas_call(
        kernel,
        out_shape=jax.ShapeDtypeStruct((out_rows, _LANES), jnp.float32),
        grid_spec=pltpu.PrefetchScalarGridSpec(
            num_scalar_prefetch=0,
            grid=(num_blocks,),
            in_specs=[
                pl.BlockSpec((block_rows, _LANES), lambda i: (i, 0)),
                pl.BlockSpec((block_rows, _LANES), lambda i: (i, 0)),
            ],
            out_specs=pl.BlockSpec((_SUBLANES, _LANES), lambda i: (i, 0)),
        ),
        compiler_params=pltpu.CompilerParams(
            dimension_semantics=("parallel",),
        ),
        cost_estimate=cost,
    )(pred2d, truth2d)

    # Tiny epilogue on (num_blocks * 8, 128) partials: sum, mean, sqrt.
    return jnp.sqrt(jnp.sum(partials) / jnp.float32(n_elements))


if __name__ == "__main__":
    key = jax.random.PRNGKey(0)
    k1, k2 = jax.random.split(key)
    # Small NCHW-like shapes consistent with a typical use of this loss.
    pred = jax.random.normal(k1, (2, 4, 16, 16), dtype=jnp.float32)
    truth = jax.random.normal(k2, (2, 4, 16, 16), dtype=jnp.float32)

    loss = l2_loss(pred, truth)
    jax.block_until_ready(loss)

    # Reference check against plain JAX.
    ref = jnp.sqrt(jnp.mean((pred - truth) ** 2))
    assert jnp.allclose(loss, ref, rtol=1e-5, atol=1e-6), (loss, ref)

    print("KERNEL_OK")
</pallas_src>

<mosaic_0001>
module attributes {stable_mosaic.version = 11 : i64} {
  func.func @_l2_partial_kernel(%arg0: i32, %arg1: memref<16x128xf32, #tpu.memory_space<vmem>>, %arg2: memref<16x128xf32, #tpu.memory_space<vmem>>, %arg3: memref<8x128xf32, #tpu.memory_space<vmem>>) attributes {dimension_semantics = [#tpu.dimension_semantics<parallel>], iteration_bounds = array<i64: 1>, scalar_prefetch = 0 : i64, scratch_operands = 0 : i64, tpu.core_type = #tpu.core_type<tc>, window_params = [{transform_indices = @transform_0, window_bounds = array<i64: 16, 128>}, {transform_indices = @transform_1, window_bounds = array<i64: 16, 128>}, {transform_indices = @transform_2, window_bounds = array<i64: 8, 128>}]} {
    %c0 = arith.constant 0 : index
    %c0_0 = arith.constant 0 : index
    %0 = vector.load %arg1[%c0, %c0_0] : memref<16x128xf32, #tpu.memory_space<vmem>>, vector<16x128xf32>
    %c0_1 = arith.constant 0 : index
    %c0_2 = arith.constant 0 : index
    %1 = vector.load %arg2[%c0_1, %c0_2] : memref<16x128xf32, #tpu.memory_space<vmem>>, vector<16x128xf32>
    %2 = arith.subf %0, %1 : vector<16x128xf32>
    %3 = arith.mulf %2, %2 : vector<16x128xf32>
    %4 = vector.shape_cast %3 : vector<16x128xf32> to vector<2x8x128xf32>
    %cst = arith.constant dense<0.000000e+00> : vector<8x128xf32>
    %5 = vector.multi_reduction <add>, %4, %cst [0] : vector<2x8x128xf32> to vector<8x128xf32>
    %c0_3 = arith.constant 0 : index
    %c0_4 = arith.constant 0 : index
    %6 = vector.load %arg3[%c0_3, %c0_4] : memref<8x128xf32, #tpu.memory_space<vmem>>, vector<8x128xf32>
    tpu.vector_store %arg3[%c0_3, %c0_4], %5 {strides = array<i32>} : memref<8x128xf32, #tpu.memory_space<vmem>>, vector<8x128xf32>,
    return
  }
  func.func @transform_0(%arg0: i32) -> (i32, i32) {
    %c0_i32 = arith.constant 0 : i32
    %c0_i32_0 = arith.constant 0 : i32
    return %arg0, %c0_i32 : i32, i32
  }
  func.func @transform_1(%arg0: i32) -> (i32, i32) {
    %c0_i32 = arith.constant 0 : i32
    %c0_i32_0 = arith.constant 0 : i32
    return %arg0, %c0_i32 : i32, i32
  }
  func.func @transform_2(%arg0: i32) -> (i32, i32) {
    %c0_i32 = arith.constant 0 : i32
    %c0_i32_0 = arith.constant 0 : i32
    return %arg0, %c0_i32 : i32, i32
  }
}

</mosaic_0001>

<bundles_post_ra>
// kernel: tpu_custom_call.1
= control target key start
LH: loop header
LB: loop body
LE: loop exit
PB: predicated region body
PF: predicated region fallthrough
CT: control target
= control target key end

     0   :  { %7 = vsyncpa [#allocation3], 0  ;;  %s184_s0 = inlined_call_operand.hbm [shape: f32[16,128], index: 0, kind: input, shape index: {}]   ;;  %s185_s1 = inlined_call_operand.hbm [shape: f32[16,128], index: 1, kind: input, shape index: {}]   ;;  %s186_s2 = inlined_call_operand.hbm [shape: f32[8,128], index: 2, kind: output, shape index: {}]  }
   0x1   :  { %8 = vsyncpa [#allocation6], 0 }
   0x2   :  { %9 = vsyncpa [#allocation4], 0  ;;  %s14_s11 = sshll.u32 %s184_s0, 4  ;;  %s155_s12 = smov [#allocation2]   ;;  %s15_s11 = int_to_ptr.hbm [resolvable:$true] %s14_s11 }
   0x3   :  { %s16_s13 = sshll.u32 %s155_s12, 4  ;;  %s27_s16 = sshll.u32 %s185_s1, 4  ;;  %s17_s13 = int_to_ptr.vmem [resolvable:$true] %s16_s13  ;;  %s28_s16 = int_to_ptr.hbm [resolvable:$true] %s27_s16 }
   0x4   :  { %s156_s17 = smov 128   ;;  %s157_s18 = smov 8  }
   0x5   :  { %22 = dma.hbm_to_vmem [thread:$0]  %s15_s11, 256, %s17_s13, [#allocation3], %s156_s17, %s156_s17, %s157_s18  }
   0x6   :  { %s158_s19 = smov [#allocation5]  }
   0x7   :  { %s29_s20 = sshll.u32 %s158_s19, 4  ;;  %s30_s20 = int_to_ptr.vmem [resolvable:$true] %s29_s20 }
   0x8   :  { %35 = dma.hbm_to_vmem [thread:$0]  %s28_s16, 256, %s30_s20, [#allocation6], %s156_s17, %s156_s17, %s157_s18  }
   0x9   :  { %149 = dma.done.wait [#allocation3], 256  }
   0xa   :  { %150 = vsyncadd [#allocation3], 4294967040 }
   0xb   :  { %151 = dma.done.wait [#allocation6], 256  }
   0xc   :  { %152 = vsyncadd [#allocation6], 4294967040  ;;  %v44_v0 = vld [vmem:[#allocation2] sm:$0xff]  ;;  %v45_v1 = vld [vmem:[#allocation2 + $0x8] sm:$0xff]  ;;  %s159_s0 = smov [#allocation7]   ;;  %s61_s23 = sshll.u32 %s186_s2, 4  ;;  %s62_s23 = int_to_ptr.hbm [resolvable:$true] %s61_s23 }
   0xd   :  { %v46_v2 = vld [vmem:[#allocation5] sm:$0xff]  ;;  %v47_v3 = vld [vmem:[#allocation5 + $0x8] sm:$0xff]  ;;  %s59_s1 = sshll.u32 %s159_s0, 4  ;;  %s60_s1 = int_to_ptr.vmem [resolvable:$true] %s59_s1 }
   0xe   :  { %v48_v4 = vsub.f32 %v44_v0, %v46_v2  ;;  %v49_v5 = vsub.f32 %v45_v1, %v47_v3 }
  0x10   :  { %v50_v6 = vmul.f32 %v48_v4, %v48_v4  ;;  %v51_v7 = vmul.f32 %v49_v5, %v49_v5 }
  0x12   :  { %v52_v8 = vadd.f32 %v51_v7, %v50_v6 }
  0x14   :  { %53 = vst [vmem:[#allocation7] sm:$0xff] %v52_v8 }
  0x15   :  { %64 = dma.vmem_to_hbm [thread:$0]  %s60_s1, 128, %s62_s23, [#allocation4]  }
  0x16   :  { %153 = dma.done.wait [#allocation4], 128  }
  0x17   :  { %154 = vsyncadd [#allocation4], 4294967168 }
  0x18   :  { %69 = vsyncpa [#allocation3], 1 }
  0x19   :  { %70 = vsyncpa [#allocation6], 1 }
  0x1a   :  { %71 = vsyncpa [#allocation4], 1 }

</bundles_post_ra>
